<compile_context>
chip_gen: v5e
topology: v5e:2x2
jax: 0.10.0
libtpu: 0.0.40
codegen_flags: <defaults>
</compile_context>

<pallas_src>
import jax
import jax.numpy as jnp
from jax import lax
from jax.experimental import pallas as pl
from jax.experimental.pallas import tpu as pltpu


TILE_B_MAX = 1024                      # static rows-per-grid-step cap (sweep 512-2048)
_VMEM_LIMIT = 32 * 1024 * 1024         # safe on v5e/v6e (128 MiB) and v7x (64 MiB) VMEM


def _round_up(x, m):
    return (x + m - 1) // m * m


def _fused_mlp_kernel(x_ref, w_ref, b_ref, wf_ref, bf_ref, o_ref):
    """One grid step = one batch tile; all hidden layers + final projection fused.

    x_ref  : (TILE_B, K0)   bf16  activation tile at true feature width (K0 = rounded in_dim)
    w_ref  : (L, P, P)      bf16  stacked, BN-folded, pre-transposed weights ([in, out])
    b_ref  : (L, 1, P)      f32   stacked, BN-folded biases
    wf_ref : (1, P)         bf16  final Linear(H, 1) weight row (zero-padded)
    bf_ref : (1, 1)         f32   final bias
    o_ref  : (1, 1, TILE_B) f32   lane-dense output row for this tile
    """
    h = x_ref[...]                                   # bf16; activations never leave VMEM
    k0 = h.shape[1]
    num_layers = w_ref.shape[0]
    # Static unroll over the (small, fixed) layer count; no HBM traffic between layers.
    for l in range(num_layers):
        # Layer 0 contracts only the real input lanes (static slice of the weight stack).
        w_l = w_ref[0, :k0, :] if l == 0 else w_ref[l]
        z = jnp.dot(h, w_l, preferred_element_type=jnp.float32)   # bf16 MXU, f32 acc
        z = z + b_ref[l]                             # bias with BN affine pre-folded in
        # ReLU fused with the bf16 downcast; Dropout is identity in eval mode.
        h = jnp.maximum(z, 0.0).astype(jnp.bfloat16)
    # Final Linear(H, 1) as an NT matmul: wf (1,P) . h (TILE_B,P)^T -> (1, TILE_B).
    # Produces the output directly in lane-dense form (no width-1 masked stores).
    out_row = lax.dot_general(
        wf_ref[...], h,
        dimension_numbers=(((1,), (1,)), ((), ())),
        preferred_element_type=jnp.float32)
    o_ref[0] = out_row + bf_ref[...]
    # TODO(synk): training-mode Dropout / BatchNorm batch statistics are not implemented
    # (inference semantics only).


def _resident_spec(shape, single_buffer):
    """BlockSpec for an operand that stays fully resident across all grid steps."""
    index_map = lambda i, _n=len(shape): (0,) * _n
    if single_buffer and hasattr(pl, "Buffered"):
        # Constant index_map => no re-DMA, but default pipelining still allocates two
        # VMEM buffers; single-buffer once the stacks are large enough to matter.
        return pl.BlockSpec(shape, index_map, pipeline_mode=pl.Buffered(1))
    return pl.BlockSpec(shape, index_map)


@jax.jit
def mlp_forward(x, w_stack, b_stack, w_final, b_final):
    batch, in_dim = x.shape

    # --- batch tiling --------------------------------------------------------------
    b16 = _round_up(batch, 16)                 # bf16 sublane packing = 16 rows
    tile_b = min(TILE_B_MAX, b16)
    if b16 // tile_b < 2 and b16 >= 32:
        # Keep >=2 grid steps when the batch allows (v7x: 2 TensorCores per chip).
        tile_b = _round_up(pl.cdiv(b16, 2), 16)
    num_tiles = pl.cdiv(b16, tile_b)
    b_pad = num_tiles * tile_b

    # --- x: bf16 at (near-)true feature width; pad rows (and K to 16) only ----------
    k0 = _round_up(in_dim, 16)                 # bf16 sublane-aligned contraction width
    x_bf = x.astype(jnp.bfloat16)
    if b_pad != batch or k0 != in_dim:
        x_bf = jnp.pad(x_bf, ((0, b_pad - batch), (0, k0 - in_dim)))

    # Single-buffer the resident operands only when they are big enough to matter
    # (negligible at ~130 KiB; binding VMEM constraint once hidden sizes grow).
    resident_bytes = (w_stack.size + w_final.size) * 2 + (b_stack.size + b_final.size) * 4
    single_buffer = resident_bytes > (4 << 20)

    out = pl.pallas_call(
        _fused_mlp_kernel,
        out_shape=jax.ShapeDtypeStruct((num_tiles, 1, tile_b), jnp.float32),
        grid=(num_tiles,),
        in_specs=[
            pl.BlockSpec((tile_b, k0), lambda i: (i, 0)),     # x tile per grid step
            _resident_spec(w_stack.shape, single_buffer),     # all weights resident
            _resident_spec(b_stack.shape, single_buffer),     # all biases resident
            _resident_spec(w_final.shape, single_buffer),
            _resident_spec(b_final.shape, single_buffer),
        ],
        out_specs=pl.BlockSpec((1, 1, tile_b), lambda i: (i, 0, 0)),  # lane-dense row
        compiler_params=pltpu.CompilerParams(
            dimension_semantics=("parallel",),                # batch axis: megacore
            vmem_limit_bytes=_VMEM_LIMIT),
    )(x_bf, w_stack, b_stack, w_final, b_final)
    return out.reshape(b_pad)[:batch].reshape(batch, 1)


def init_mlp_params(key, input_size, hidden_sizes, pad_dim):
    """Deterministic synthetic params mirroring the PyTorch module; inference BatchNorm1d
    folded into the preceding Linear. Returns f32 (folded) stacks; caller casts to bf16."""
    bn_eps = 1e-5
    dims = [input_size] + list(hidden_sizes)
    num_layers = len(hidden_sizes)
    w_stack = jnp.zeros((num_layers, pad_dim, pad_dim), jnp.float32)
    b_stack = jnp.zeros((num_layers, 1, pad_dim), jnp.float32)
    for l in range(num_layers):
        key, k_w, k_b, k_g, k_be, k_m, k_v = jax.random.split(key, 7)
        fan_in, fan_out = dims[l], dims[l + 1]
        bound = 1.0 / jnp.sqrt(fan_in)
        w = jax.random.uniform(k_w, (fan_out, fan_in), jnp.float32, -bound, bound)
        b = jax.random.uniform(k_b, (fan_out,), jnp.float32, -bound, bound)
        gamma = 1.0 + 0.1 * jax.random.normal(k_g, (fan_out,), jnp.float32)
        beta = 0.1 * jax.random.normal(k_be, (fan_out,), jnp.float32)
        run_mean = 0.1 * jax.random.normal(k_m, (fan_out,), jnp.float32)
        run_var = jnp.abs(1.0 + 0.1 * jax.random.normal(k_v, (fan_out,), jnp.float32))
        # Fold inference BatchNorm1d into the preceding Linear:
        #   y = scale*(x @ W^T + b) + shift = x @ (W^T*scale) + (b*scale + shift)
        inv_std = 1.0 / jnp.sqrt(run_var + bn_eps)
        scale = gamma * inv_std
        shift = beta - gamma * run_mean * inv_std
        w_fold_t = w.T * scale[None, :]          # [in, out]
        b_fold = b * scale + shift
        w_stack = w_stack.at[l, :fan_in, :fan_out].set(w_fold_t)
        b_stack = b_stack.at[l, 0, :fan_out].set(b_fold)
    # Final Linear(hidden_sizes[-1], 1)
    key, k_w, k_b = jax.random.split(key, 3)
    fan_in = hidden_sizes[-1]
    bound = 1.0 / jnp.sqrt(fan_in)
    w_last = jax.random.uniform(k_w, (1, fan_in), jnp.float32, -bound, bound)
    b_last = jax.random.uniform(k_b, (1,), jnp.float32, -bound, bound)
    w_final = jnp.zeros((1, pad_dim), jnp.float32).at[0, :fan_in].set(w_last[0])
    b_final = b_last.reshape(1, 1)
    return w_stack, b_stack, w_final, b_final


def _ref_forward(x, w_stack, b_stack, w_final, b_final, cast_bf16):
    """Plain-JAX reference (padded layout); cast_bf16 mirrors the kernel's matmul dtypes."""
    batch, in_dim = x.shape
    pad_dim = w_stack.shape[-1]
    h = jnp.zeros((batch, pad_dim), jnp.float32).at[:, :in_dim].set(x)
    for l in range(w_stack.shape[0]):
        lhs = h.astype(jnp.bfloat16) if cast_bf16 else h
        z = jnp.dot(lhs, w_stack[l], preferred_element_type=jnp.float32) + b_stack[l]
        h = jnp.maximum(z, 0.0)
    lhs = h.astype(jnp.bfloat16) if cast_bf16 else h
    return jnp.dot(lhs, w_final.T, preferred_element_type=jnp.float32) + b_final


if __name__ == "__main__":
    input_size = 32
    hidden_sizes = [64, 32]
    batch = 8
    pad_dim = _round_up(max([input_size] + hidden_sizes), 128)   # 128-lane padded width

    key = jax.random.PRNGKey(0)
    k_params, k_x = jax.random.split(key)
    w_f32, b_stack, wf_f32, b_final = init_mlp_params(
        k_params, input_size, hidden_sizes, pad_dim)
    w_bf16 = w_f32.astype(jnp.bfloat16)
    wf_bf16 = wf_f32.astype(jnp.bfloat16)
    x = jax.random.normal(k_x, (batch, input_size), jnp.float32)

    out = mlp_forward(x, w_bf16, b_stack, wf_bf16, b_final)
    out = jax.block_until_ready(out)

    # Strict check vs. a reference doing the same bf16-matmul / f32-accumulate math.
    ref_bf16 = _ref_forward(x, w_bf16, b_stack, wf_bf16, b_final, True)
    # Loose check vs. full-f32 original-module semantics (bf16 quantization drift only).
    ref_f32 = _ref_forward(x, w_f32, b_stack, wf_f32, b_final, False)

    assert out.shape == (batch, 1), out.shape
    assert jnp.allclose(out, ref_bf16, atol=1e-3, rtol=1e-3), "mismatch vs bf16 reference"
    assert jnp.allclose(out, ref_f32, atol=1e-1, rtol=1e-1), "mismatch vs f32 reference"

    print("KERNEL_OK")
</pallas_src>

<mosaic_0001>
module attributes {stable_mosaic.version = 11 : i64} {
  func.func @_fused_mlp_kernel(%arg0: i32, %arg1: memref<16x32xbf16, #tpu.memory_space<vmem>>, %arg2: memref<2x128x128xbf16, #tpu.memory_space<vmem>>, %arg3: memref<2x1x128xf32, #tpu.memory_space<vmem>>, %arg4: memref<1x128xbf16, #tpu.memory_space<vmem>>, %arg5: memref<1x1xf32, #tpu.memory_space<vmem>>, %arg6: memref<1x1x16xf32, #tpu.memory_space<vmem>>) attributes {dimension_semantics = [#tpu.dimension_semantics<parallel>], iteration_bounds = array<i64: 1>, scalar_prefetch = 0 : i64, scratch_operands = 0 : i64, tpu.core_type = #tpu.core_type<tc>, window_params = [{transform_indices = @transform_0, window_bounds = array<i64: 16, 32>}, {pipeline_mode = #tpu.pipeline_mode<synchronous>, transform_indices = @transform_1, window_bounds = array<i64: 2, 128, 128>}, {pipeline_mode = #tpu.pipeline_mode<synchronous>, transform_indices = @transform_2, window_bounds = array<i64: 2, 1, 128>}, {pipeline_mode = #tpu.pipeline_mode<synchronous>, transform_indices = @transform_3, window_bounds = array<i64: 1, 128>}, {pipeline_mode = #tpu.pipeline_mode<synchronous>, transform_indices = @transform_4, window_bounds = array<i64: 1, 1>}, {transform_indices = @transform_5, window_bounds = array<i64: 1, 1, 16>}]} {
    %c0 = arith.constant 0 : index
    %c0_0 = arith.constant 0 : index
    %0 = vector.load %arg1[%c0, %c0_0] : memref<16x32xbf16, #tpu.memory_space<vmem>>, vector<16x32xbf16>
    %c0_1 = arith.constant 0 : index
    %c0_2 = arith.constant 0 : index
    %c0_3 = arith.constant 0 : index
    %1 = vector.load %arg2[%c0_1, %c0_2, %c0_3] : memref<2x128x128xbf16, #tpu.memory_space<vmem>>, vector<1x32x128xbf16>
    %2 = vector.shape_cast %1 : vector<1x32x128xbf16> to vector<32x128xbf16>
    %cst = arith.constant dense<0.000000e+00> : vector<16x128xf32>
    %3 = tpu.matmul %0, %2, %cst {dimension_numbers = #tpu.dot_dimension_numbers<[1], [0], [0], [1], [0, 0, 1, 1], [], []>} : vector<16x32xbf16>, vector<32x128xbf16>, vector<16x128xf32> -> vector<16x128xf32>
    %c0_4 = arith.constant 0 : index
    %c0_5 = arith.constant 0 : index
    %c0_6 = arith.constant 0 : index
    %4 = vector.load %arg3[%c0_4, %c0_5, %c0_6] : memref<2x1x128xf32, #tpu.memory_space<vmem>>, vector<1x1x128xf32>
    %5 = vector.shape_cast %4 : vector<1x1x128xf32> to vector<1x128xf32>
    %6 = vector.broadcast %5 : vector<1x128xf32> to vector<16x128xf32>
    %7 = arith.addf %3, %6 : vector<16x128xf32>
    %cst_7 = arith.constant 0.000000e+00 : f32
    %8 = vector.broadcast %cst_7 : f32 to vector<16x128xf32>
    %9 = arith.maximumf %7, %8 : vector<16x128xf32>
    %10 = arith.truncf %9 : vector<16x128xf32> to vector<16x128xbf16>
    %c1 = arith.constant 1 : index
    %c0_8 = arith.constant 0 : index
    %c0_9 = arith.constant 0 : index
    %11 = vector.load %arg2[%c1, %c0_8, %c0_9] : memref<2x128x128xbf16, #tpu.memory_space<vmem>>, vector<1x128x128xbf16>
    %12 = vector.shape_cast %11 : vector<1x128x128xbf16> to vector<128x128xbf16>
    %cst_10 = arith.constant dense<0.000000e+00> : vector<16x128xf32>
    %13 = tpu.matmul %10, %12, %cst_10 {dimension_numbers = #tpu.dot_dimension_numbers<[1], [0], [0], [1], [0, 0, 1, 1], [], []>} : vector<16x128xbf16>, vector<128x128xbf16>, vector<16x128xf32> -> vector<16x128xf32>
    %c1_11 = arith.constant 1 : index
    %c0_12 = arith.constant 0 : index
    %c0_13 = arith.constant 0 : index
    %14 = vector.load %arg3[%c1_11, %c0_12, %c0_13] : memref<2x1x128xf32, #tpu.memory_space<vmem>>, vector<1x1x128xf32>
    %15 = vector.shape_cast %14 : vector<1x1x128xf32> to vector<1x128xf32>
    %16 = vector.broadcast %15 : vector<1x128xf32> to vector<16x128xf32>
    %17 = arith.addf %13, %16 : vector<16x128xf32>
    %cst_14 = arith.constant 0.000000e+00 : f32
    %18 = vector.broadcast %cst_14 : f32 to vector<16x128xf32>
    %19 = arith.maximumf %17, %18 : vector<16x128xf32>
    %20 = arith.truncf %19 : vector<16x128xf32> to vector<16x128xbf16>
    %c0_15 = arith.constant 0 : index
    %c0_16 = arith.constant 0 : index
    %21 = vector.load %arg4[%c0_15, %c0_16] : memref<1x128xbf16, #tpu.memory_space<vmem>>, vector<1x128xbf16>
    %cst_17 = arith.constant dense<0.000000e+00> : vector<1x16xf32>
    %22 = tpu.matmul %21, %20, %cst_17 {dimension_numbers = #tpu.dot_dimension_numbers<[1], [1], [0], [0], [0, 0, 1, 0], [], []>} : vector<1x128xbf16>, vector<16x128xbf16>, vector<1x16xf32> -> vector<1x16xf32>
    %c0_18 = arith.constant 0 : index
    %c0_19 = arith.constant 0 : index
    %23 = vector.load %arg5[%c0_18, %c0_19] : memref<1x1xf32, #tpu.memory_space<vmem>>, vector<1x1xf32>
    %24 = vector.broadcast %23 : vector<1x1xf32> to vector<1x16xf32>
    %25 = arith.addf %22, %24 : vector<1x16xf32>
    %c0_20 = arith.constant 0 : index
    %c0_21 = arith.constant 0 : index
    %c0_22 = arith.constant 0 : index
    %26 = vector.load %arg6[%c0_20, %c0_21, %c0_22] : memref<1x1x16xf32, #tpu.memory_space<vmem>>, vector<1x1x16xf32>
    %27 = vector.shape_cast %26 : vector<1x1x16xf32> to vector<1x16xf32>
    %28 = vector.shape_cast %25 : vector<1x16xf32> to vector<1x1x16xf32>
    tpu.vector_store %arg6[%c0_20, %c0_21, %c0_22], %28 {strides = array<i32>} : memref<1x1x16xf32, #tpu.memory_space<vmem>>, vector<1x1x16xf32>,
    return
  }
  func.func @transform_0(%arg0: i32) -> (i32, i32) {
    %c0_i32 = arith.constant 0 : i32
    %c0_i32_0 = arith.constant 0 : i32
    return %arg0, %c0_i32 : i32, i32
  }
  func.func @transform_1(%arg0: i32) -> (i32, i32, i32) {
    %c0_i32 = arith.constant 0 : i32
    %c0_i32_0 = arith.constant 0 : i32
    %c0_i32_1 = arith.constant 0 : i32
    %c0_i32_2 = arith.constant 0 : i32
    return %c0_i32, %c0_i32_0, %c0_i32_1 : i32, i32, i32
  }
  func.func @transform_2(%arg0: i32) -> (i32, i32, i32) {
    %c0_i32 = arith.constant 0 : i32
    %c0_i32_0 = arith.constant 0 : i32
    %c0_i32_1 = arith.constant 0 : i32
    %c0_i32_2 = arith.constant 0 : i32
    return %c0_i32, %c0_i32_0, %c0_i32_1 : i32, i32, i32
  }
  func.func @transform_3(%arg0: i32) -> (i32, i32) {
    %c0_i32 = arith.constant 0 : i32
    %c0_i32_0 = arith.constant 0 : i32
    %c0_i32_1 = arith.constant 0 : i32
    return %c0_i32, %c0_i32_0 : i32, i32
  }
  func.func @transform_4(%arg0: i32) -> (i32, i32) {
    %c0_i32 = arith.constant 0 : i32
    %c0_i32_0 = arith.constant 0 : i32
    %c0_i32_1 = arith.constant 0 : i32
    return %c0_i32, %c0_i32_0 : i32, i32
  }
  func.func @transform_5(%arg0: i32) -> (i32, i32, i32) {
    %c0_i32 = arith.constant 0 : i32
    %c0_i32_0 = arith.constant 0 : i32
    %c0_i32_1 = arith.constant 0 : i32
    return %arg0, %c0_i32, %c0_i32_0 : i32, i32, i32
  }
}

</mosaic_0001>

<bundles_post_ra>
// kernel: mlp_forward.1
= control target key start
LH: loop header
LB: loop body
LE: loop exit
PB: predicated region body
PF: predicated region fallthrough
CT: control target
= control target key end

     0   :  { %s347_s0 = inlined_call_operand.vmem [shape: bf16[16,32], index: 0, kind: input, shape index: {}]   ;;  %s348_s1 = inlined_call_operand.hbm [shape: bf16[2,128,128], index: 1, kind: input, shape index: {}]   ;;  %s349_s2 = inlined_call_operand.vmem [shape: f32[2,1,128], index: 2, kind: input, shape index: {}]   ;;  %s350_s3 = inlined_call_operand.vmem [shape: bf16[1,128], index: 3, kind: input, shape index: {}]   ;;  %s351_s4 = inlined_call_operand.<no memory space> [shape: f32[1,1], index: 4, kind: input, shape index: {}]   ;;  %s352_s5 = inlined_call_operand.vmem [shape: f32[1,1,16], index: 5, kind: output, shape index: {}]  }
   0x1   :  { %v10_v0 = vstv %s351_s4 }
   0x2   :  { %11 = vst [vmem:[#allocation2] sm:$0x1] %v10_v0 }
   0x3   :  { %12 = vsyncpa [#allocation4], 0  ;;  %s19_s22 = sshll.u32 %s348_s1, 4  ;;  %s292_s23 = smov [#allocation3]   ;;  %s20_s22 = int_to_ptr.hbm [resolvable:$true] %s19_s22 }
   0x4   :  { %s21_s24 = sshll.u32 %s292_s23, 4  ;;  %s293_s25 = smov 64   ;;  %s22_s24 = int_to_ptr.vmem [resolvable:$true] %s21_s24 }
   0x5   :  { %s294_s26 = smov 4  }
   0x6   :  { %27 = dma.hbm_to_vmem [thread:$0]  %s20_s22, 2048, %s22_s24, [#allocation4], %s293_s25, %s293_s25, %s294_s26  }
   0x7   :  { %290 = dma.done.wait [#allocation4], 2048  }
   0x8   :  { %291 = vsyncadd [#allocation4], 4294965248  ;;  %v250_v1 = vld [vmem:[#allocation3 + $0x8] sm:$0xff]  ;;  %v258_v2 = vld [vmem:[#allocation3 + $0x78] sm:$0xff]  ;;  %vm66_vm0 = vcmask 261120   ;;  %v295_v21 = vmov 0  }
   0x9   :  { %76 = vmatpush.bf16.msra.mxu0 %v250_v1  ;;  %v249_v3 = vld [vmem:[#allocation3] sm:$0xff]  ;;  %157 = vmatpush.bf16.msra.mxu1 %v258_v2  ;;  %v257_v4 = vld [vmem:[#allocation3 + $0x70] sm:$0xff]  ;;  %v256_v6 = vld [vmem:[#allocation3 + $0x68] sm:$0xff]  ;;  %vm195_vm1 = vcmask 122880  }
   0xa   :  { %v248_v5 = vld [vmem:[%s347_s0] sm:$0xff]  ;;  %v253_v9 = vld [vmem:[#allocation3 + $0x50] sm:$0xff]  ;;  %v252_v10 = vld [vmem:[#allocation3 + $0x48] sm:$0xff]  ;;  %263 = vset.pattern.permute.xlu0 %v295_v21 }
   0xb   :  { %v255_v7 = vld [vmem:[#allocation3 + $0x60] sm:$0xff]  ;;  %v254_v8 = vld [vmem:[#allocation3 + $0x58] sm:$0xff] }
   0xc   :  { %v251_v11 = vld [vmem:[#allocation3 + $0x40] sm:$0xff]  ;;  %v264_v13 = vld [vmem:[%s349_s2] ss:$0 sm:$0xff] }
   0xd   :  { %77 = vmatpush.bf16.msra.mxu0 %v249_v3  ;;  %158 = vmatpush.bf16.msra.mxu1 %v257_v4  ;;  %v175_v20 = vld [vmem:[#allocation2] sm:$0x1]  ;;  %v265_v23 = vld [vmem:[%s349_s2 + $0x1] ss:$0 sm:$0xff] }
   0xe   :  { %178 = vperm.xlu0 %263, %v175_v20   ;;  %v174_v30 = vld [vmem:[%s350_s3] sm:$0x1] }
  0x10   :  { %214 = vmatmul.msk.bf16.vlgmr.msra.gmra.mxu0 %vm66_vm0, %v248_v5 }
  0x11   :  { %159 = vmatpush.bf16.msra.mxu1 %v256_v6 }
  0x15   :  { %160 = vmatpush.bf16.msra.mxu1 %v255_v7 }
  0x19   :  { %161 = vmatpush.bf16.msra.mxu1 %v254_v8 }
  0x1d   :  { %162 = vmatpush.bf16.msra.mxu1 %v253_v9 }
  0x21   :  { %163 = vmatpush.bf16.msra.mxu1 %v252_v10 }
  0x25   :  { %164 = vmatpush.bf16.msra.mxu1 %v251_v11 }
  0x80   :  { %v179_v31 = vpop.permute.xlu0 %178 }
  0x81   :  { %v181_v32 = vperm.slane %v179_v31, 0 }
  0x8d   :  { %v79_v12 = vpop.f32.mrf.mxu0 }
  0x8e   :  { %v80_v14 = vadd.f32 %v264_v13, %v79_v12 }
  0x90   :  { %v84_v17 = vmax.f32 %v80_v14, 0.0 }
  0x95   :  { %v81_v15 = vpop.f32.mrf.mxu0 }
  0x96   :  { %v82_v16 = vadd.f32 %v264_v13, %v81_v15 }
  0x98   :  { %v85_v18 = vmax.f32 %v82_v16, 0.0 }
  0x9a   :  { %v86_v19 = vpack.c.bf16 %v85_v18, %v84_v17 }
  0x9c   :  { %165 = vmatmul.bf16.vlgmr.msra.gmra.mxu1 %v86_v19 }
 0x119   :  { %v166_v22 = vpop.f32.mrf.mxu1 }
 0x11a   :  { %v167_v24 = vadd.f32 %v265_v23, %v166_v22 }
 0x11c   :  { %v171_v27 = vmax.f32 %v167_v24, 0.0 }
 0x121   :  { %v168_v25 = vpop.f32.mrf.mxu1 }
 0x122   :  { %v169_v26 = vadd.f32 %v265_v23, %v168_v25 }
 0x124   :  { %v172_v28 = vmax.f32 %v169_v26, 0.0 }
 0x126   :  { %v173_v29 = vpack.c.bf16 %v172_v28, %v171_v27 }
 0x128   :  { %189 = vmatpush.bf16.xpose.msra.mxu2 %v173_v29 }
 0x12f   :  { %190 = vmatmul.bf16.vlgmr.msra.gmra.mxu2 %v174_v30 }
 0x1b2   :  { %v191_v33 = vpop.f32.mrf.mxu2 }
 0x1b3   :  { %v192_v34 = vadd.f32 %v191_v33, %v181_v32 }
 0x1b5   :  { %196 = vst.msk [vmem:[%s352_s5] sm:$0x1] %vm195_vm1, %v192_v34 }
 0x1ba   :  { %v193_v35 = vpop.f32.mrf.mxu2 }
 0x1bb   :  { %201 = vsyncpa [#allocation4], 1 }

</bundles_post_ra>
